<compile_context>
chip_gen: v6e
topology: v6e:2x2x1
jax: 0.10.0
libtpu: 0.0.40
codegen_flags: <defaults>
</compile_context>

<pallas_src>
import functools

import jax
import jax.numpy as jnp
import numpy as np
from jax import lax
from jax.experimental import pallas as pl
from jax.experimental.pallas import tpu as pltpu

# ---------------- model hyperparameters (small, consistent with the module) ---
B = 2          # batch
T = 8          # sequence length (T1)
N_HEADS = 4
D_MODEL = 32
D_HEAD = D_MODEL // N_HEADS
SCALE = float(D_HEAD) ** -0.5
IS_CAUSAL = True
# TODO(synk): attn_prior (log-softmax + prior) path and KV caching (use_cache=True)
# are not implemented; this covers attn_prior=None, use_cache=False. Dropout is an
# eval-mode identity. bf16 MXU inputs (v6e/v7x win) left out to keep f32 numerics.


def _attention_kernel(x_ref, qmask_ref, wqkv_ref, wo_ref, *out_refs, return_attn):
    """Whole (tiny) problem in one grid step. Heads are handled as batched matmuls
    over the flattened group axis G = B * N_HEADS for the score / PV stages only;
    the Q/K/V and output projections are single lane-dense 2-D matmuls."""
    if return_attn:
        y_ref, pa_ref = out_refs
    else:
        (y_ref,) = out_refs
        pa_ref = None

    G = B * N_HEADS
    x = x_ref[...]          # (B, T, C)  f32
    qm = qmask_ref[...]     # (B, T)     f32
    w_qkv = wqkv_ref[...]   # (C, 3C)    fused, lane-dense
    w_o = wo_ref[...]       # (C, C)

    # ---- fused QKV projection: one lane-dense (B*T, C) @ (C, 3C) MXU push -----
    qkv = jnp.dot(x.reshape(B * T, D_MODEL), w_qkv,
                  preferred_element_type=jnp.float32)               # (B*T, 3C)

    # Head split: only cheap static lane slices + a leading-axis stack; no per-head
    # matmuls and no weight replication over batch.
    def split_heads(col0):  # -> (G, T, Dh), g = b * N_HEADS + h (b-major)
        per_head = [
            qkv[:, col0 + h * D_HEAD: col0 + (h + 1) * D_HEAD].reshape(B, T, D_HEAD)
            for h in range(N_HEADS)
        ]
        return jnp.stack(per_head, axis=1).reshape(G, T, D_HEAD)

    q = split_heads(0)
    k = split_heads(D_MODEL)
    v = split_heads(2 * D_MODEL)

    # ---- scores: head-batched matmul, contraction on Dh (no materialized K^T) --
    s = jnp.einsum('gqd,gkd->gqk', q, k,
                   preferred_element_type=jnp.float32) * SCALE      # (G, T, T)

    # ---- single fused mask select: key padding AND causal -----------------------
    key_ok = jnp.broadcast_to(qm[:, None, :], (B, N_HEADS, T)).reshape(G, 1, T) > 0.0
    neg_inf = jnp.float32(-jnp.inf)
    if IS_CAUSAL:
        row = lax.broadcasted_iota(jnp.int32, (T, T), 0)
        col = lax.broadcasted_iota(jnp.int32, (T, T), 1)
        mask = jnp.logical_and(key_ok, (col <= row)[None])          # (G, T, T)
    else:
        mask = key_ok
    s = jnp.where(mask, s, neg_inf)

    # ---- numerically stable softmax over keys; reciprocal routed to the EUP -----
    m = jnp.max(s, axis=-1, keepdims=True)
    e = jnp.exp(s - m)
    l = jnp.sum(e, axis=-1, keepdims=True)
    p = e * pl.reciprocal(l, approx=True)
    # The reference only re-zeroes key-padded columns (causal zeros fall out of exp).
    p = jnp.where(key_ok, p, jnp.float32(0.0))
    # NOTE: fully-masked rows produce NaN exactly like the PyTorch reference does.

    if return_attn:
        # Single packed output block: index 0 = attn_prob, index 1 = attn_score.
        pa_ref[0] = p.reshape(B, N_HEADS, T, T)
        pa_ref[1] = s.reshape(B, N_HEADS, T, T)

    # ---- PV (head-batched) + single lane-dense output projection ----------------
    ctx = jnp.einsum('gqk,gkd->gqd', p, v,
                     preferred_element_type=jnp.float32)             # (G, T, Dh)
    ctx = ctx.reshape(B, N_HEADS, T, D_HEAD)
    ctx_flat = jnp.concatenate([ctx[:, h] for h in range(N_HEADS)],
                               axis=-1).reshape(B * T, D_MODEL)      # (B*T, C)
    y = jnp.dot(ctx_flat, w_o, preferred_element_type=jnp.float32)   # (B*T, C)
    y_ref[...] = y.reshape(B, T, D_MODEL)


@functools.partial(jax.jit, static_argnames=("return_attn",))
def attention_forward(query, query_mask, w_qkv_t, w_o_t, *, return_attn=True):
    """query: (B, T, C) f32; query_mask: (B, T) f32; weights pre-transposed (in, out):
    w_qkv_t: (C, 3C), w_o_t: (C, C)."""
    y_shape = jax.ShapeDtypeStruct((B, T, D_MODEL), jnp.float32)
    y_spec = pl.BlockSpec((B, T, D_MODEL), lambda i: (0, 0, 0))

    in_specs = [
        pl.BlockSpec((B, T, D_MODEL), lambda i: (0, 0, 0)),
        pl.BlockSpec((B, T), lambda i: (0, 0)),
        pl.BlockSpec((D_MODEL, 3 * D_MODEL), lambda i: (0, 0)),
        pl.BlockSpec((D_MODEL, D_MODEL), lambda i: (0, 0)),
    ]
    if return_attn:
        pa_shape = jax.ShapeDtypeStruct((2, B, N_HEADS, T, T), jnp.float32)
        pa_spec = pl.BlockSpec((2, B, N_HEADS, T, T), lambda i: (0, 0, 0, 0, 0))
        out_shape = (y_shape, pa_shape)
        out_specs = [y_spec, pa_spec]
    else:
        out_shape = y_shape
        out_specs = y_spec

    kernel = functools.partial(_attention_kernel, return_attn=return_attn)
    outs = pl.pallas_call(
        kernel,
        out_shape=out_shape,
        grid_spec=pltpu.PrefetchScalarGridSpec(
            num_scalar_prefetch=0,
            grid=(1,),                      # launch-bound problem: one step everywhere
            in_specs=in_specs,
            out_specs=out_specs,
        ),
        compiler_params=pltpu.CompilerParams(
            dimension_semantics=("arbitrary",)),
    )(query, query_mask, w_qkv_t, w_o_t)

    if return_attn:
        y, packed = outs
        return y, packed[0], packed[1]
    return outs


def _reference(query, query_mask, w_qkv_t, w_o_t):
    """Pure-JAX reference mirroring the PyTorch attn_naive + o_net (eval mode)."""
    qkv = query @ w_qkv_t                                   # (B, T, 3C)
    q, k, v = jnp.split(qkv, 3, axis=-1)

    def split_heads(x):  # (B, T, C) -> (B, H, T, Dh)
        return x.reshape(B, T, N_HEADS, D_HEAD).transpose(0, 2, 1, 3)

    q, k, v = split_heads(q), split_heads(k), split_heads(v)
    s = jnp.einsum("bhtd,bhsd->bhts", q, k) * SCALE         # (B, H, T, T)
    key_ok = (query_mask > 0.0)[:, None, None, :]
    s = jnp.where(key_ok, s, -jnp.inf)
    causal = jnp.tril(jnp.ones((T, T), bool))[None, None]
    s = jnp.where(causal, s, -jnp.inf)
    p = jax.nn.softmax(s, axis=-1)
    p = jnp.where(key_ok, p, 0.0)
    y = jnp.einsum("bhts,bhsd->bhtd", p, v)
    y = y.transpose(0, 2, 1, 3).reshape(B, T, D_MODEL)
    return y @ w_o_t, p, s


if __name__ == "__main__":
    key = jax.random.PRNGKey(0)
    k_q, k_wqkv, k_wo = jax.random.split(key, 3)

    query = jax.random.normal(k_q, (B, T, D_MODEL), dtype=jnp.float32)
    # last position of batch 1 padded out (exercise the key-mask path)
    query_mask = jnp.ones((B, T), dtype=jnp.float32).at[1, -1].set(0.0)

    # Deterministic torch.nn.Linear-style init, stored pre-transposed as (in, out).
    bound = 1.0 / np.sqrt(D_MODEL)
    w_qkv_t = jax.random.uniform(k_wqkv, (D_MODEL, 3 * D_MODEL),
                                 minval=-bound, maxval=bound, dtype=jnp.float32)
    w_o_t = jax.random.uniform(k_wo, (D_MODEL, D_MODEL),
                               minval=-bound, maxval=bound, dtype=jnp.float32)

    y, attn_prob, attn_score = attention_forward(
        query, query_mask, w_qkv_t, w_o_t, return_attn=True)
    jax.block_until_ready((y, attn_prob, attn_score))

    y_ref, p_ref, s_ref = _reference(query, query_mask, w_qkv_t, w_o_t)
    # attn_score never goes through the approximate reciprocal -> tight tolerance.
    np.testing.assert_allclose(np.asarray(attn_score), np.asarray(s_ref),
                               rtol=1e-4, atol=1e-5)
    # attn_prob / y use pl.reciprocal(approx=True) on the EUP -> loosened tolerance.
    np.testing.assert_allclose(np.asarray(attn_prob), np.asarray(p_ref),
                               rtol=5e-3, atol=5e-3)
    np.testing.assert_allclose(np.asarray(y), np.asarray(y_ref),
                               rtol=5e-3, atol=5e-3)

    # Lean path: skip attn_prob / attn_score materialization (drops the O(H*T^2)
    # writeback entirely).
    y_only = attention_forward(query, query_mask, w_qkv_t, w_o_t, return_attn=False)
    jax.block_until_ready(y_only)
    np.testing.assert_allclose(np.asarray(y_only), np.asarray(y_ref),
                               rtol=5e-3, atol=5e-3)

    print("KERNEL_OK")
</pallas_src>

<mosaic_0001>
module attributes {stable_mosaic.version = 11 : i64} {
  func.func @_attention_kernel(%arg0: i32, %arg1: memref<2x8x32xf32, #tpu.memory_space<vmem>>, %arg2: memref<2x8xf32, #tpu.memory_space<vmem>>, %arg3: memref<32x96xf32, #tpu.memory_space<vmem>>, %arg4: memref<32x32xf32, #tpu.memory_space<vmem>>, %arg5: memref<2x8x32xf32, #tpu.memory_space<vmem>>, %arg6: memref<2x2x4x8x8xf32, #tpu.memory_space<vmem>>) attributes {dimension_semantics = [#tpu.dimension_semantics<arbitrary>], iteration_bounds = array<i64: 1>, scalar_prefetch = 0 : i64, scratch_operands = 0 : i64, tpu.core_type = #tpu.core_type<tc>, window_params = [{pipeline_mode = #tpu.pipeline_mode<synchronous>, transform_indices = @transform_0, window_bounds = array<i64: 2, 8, 32>}, {pipeline_mode = #tpu.pipeline_mode<synchronous>, transform_indices = @transform_1, window_bounds = array<i64: 2, 8>}, {pipeline_mode = #tpu.pipeline_mode<synchronous>, transform_indices = @transform_2, window_bounds = array<i64: 32, 96>}, {pipeline_mode = #tpu.pipeline_mode<synchronous>, transform_indices = @transform_3, window_bounds = array<i64: 32, 32>}, {pipeline_mode = #tpu.pipeline_mode<synchronous>, transform_indices = @transform_4, window_bounds = array<i64: 2, 8, 32>}, {pipeline_mode = #tpu.pipeline_mode<synchronous>, transform_indices = @transform_5, window_bounds = array<i64: 2, 2, 4, 8, 8>}]} {
    %c0 = arith.constant 0 : index
    %c0_0 = arith.constant 0 : index
    %c0_1 = arith.constant 0 : index
    %0 = vector.load %arg1[%c0, %c0_0, %c0_1] : memref<2x8x32xf32, #tpu.memory_space<vmem>>, vector<2x8x32xf32>
    %c0_2 = arith.constant 0 : index
    %c0_3 = arith.constant 0 : index
    %1 = vector.load %arg2[%c0_2, %c0_3] : memref<2x8xf32, #tpu.memory_space<vmem>>, vector<2x8xf32>
    %c0_4 = arith.constant 0 : index
    %c0_5 = arith.constant 0 : index
    %2 = vector.load %arg3[%c0_4, %c0_5] : memref<32x96xf32, #tpu.memory_space<vmem>>, vector<32x96xf32>
    %c0_6 = arith.constant 0 : index
    %c0_7 = arith.constant 0 : index
    %3 = vector.load %arg4[%c0_6, %c0_7] : memref<32x32xf32, #tpu.memory_space<vmem>>, vector<32x32xf32>
    %4 = vector.shape_cast %0 : vector<2x8x32xf32> to vector<16x32xf32>
    %cst = arith.constant dense<0.000000e+00> : vector<16x96xf32>
    %5 = tpu.matmul %4, %2, %cst {dimension_numbers = #tpu.dot_dimension_numbers<[1], [0], [0], [1], [0, 0, 1, 1], [], []>} : vector<16x32xf32>, vector<32x96xf32>, vector<16x96xf32> -> vector<16x96xf32>
    %6 = vector.extract_strided_slice %5 {offsets = [0, 0], sizes = [16, 8], strides = [1, 1]} : vector<16x96xf32> to vector<16x8xf32>
    %7 = vector.shape_cast %6 : vector<16x8xf32> to vector<2x8x8xf32>
    %8 = vector.extract_strided_slice %5 {offsets = [0, 8], sizes = [16, 8], strides = [1, 1]} : vector<16x96xf32> to vector<16x8xf32>
    %9 = vector.shape_cast %8 : vector<16x8xf32> to vector<2x8x8xf32>
    %10 = vector.extract_strided_slice %5 {offsets = [0, 16], sizes = [16, 8], strides = [1, 1]} : vector<16x96xf32> to vector<16x8xf32>
    %11 = vector.shape_cast %10 : vector<16x8xf32> to vector<2x8x8xf32>
    %12 = vector.extract_strided_slice %5 {offsets = [0, 24], sizes = [16, 8], strides = [1, 1]} : vector<16x96xf32> to vector<16x8xf32>
    %13 = vector.shape_cast %12 : vector<16x8xf32> to vector<2x8x8xf32>
    %14 = vector.shape_cast %7 : vector<2x8x8xf32> to vector<2x1x8x8xf32>
    %15 = vector.shape_cast %9 : vector<2x8x8xf32> to vector<2x1x8x8xf32>
    %16 = vector.shape_cast %11 : vector<2x8x8xf32> to vector<2x1x8x8xf32>
    %17 = vector.shape_cast %13 : vector<2x8x8xf32> to vector<2x1x8x8xf32>
    %18 = tpu.concatenate %14, %15, %16, %17 in 1 : vector<2x1x8x8xf32>, vector<2x1x8x8xf32>, vector<2x1x8x8xf32>, vector<2x1x8x8xf32> -> vector<2x4x8x8xf32>
    %19 = vector.shape_cast %18 : vector<2x4x8x8xf32> to vector<8x8x8xf32>
    %20 = vector.extract_strided_slice %5 {offsets = [0, 32], sizes = [16, 8], strides = [1, 1]} : vector<16x96xf32> to vector<16x8xf32>
    %21 = vector.shape_cast %20 : vector<16x8xf32> to vector<2x8x8xf32>
    %22 = vector.extract_strided_slice %5 {offsets = [0, 40], sizes = [16, 8], strides = [1, 1]} : vector<16x96xf32> to vector<16x8xf32>
    %23 = vector.shape_cast %22 : vector<16x8xf32> to vector<2x8x8xf32>
    %24 = vector.extract_strided_slice %5 {offsets = [0, 48], sizes = [16, 8], strides = [1, 1]} : vector<16x96xf32> to vector<16x8xf32>
    %25 = vector.shape_cast %24 : vector<16x8xf32> to vector<2x8x8xf32>
    %26 = vector.extract_strided_slice %5 {offsets = [0, 56], sizes = [16, 8], strides = [1, 1]} : vector<16x96xf32> to vector<16x8xf32>
    %27 = vector.shape_cast %26 : vector<16x8xf32> to vector<2x8x8xf32>
    %28 = vector.shape_cast %21 : vector<2x8x8xf32> to vector<2x1x8x8xf32>
    %29 = vector.shape_cast %23 : vector<2x8x8xf32> to vector<2x1x8x8xf32>
    %30 = vector.shape_cast %25 : vector<2x8x8xf32> to vector<2x1x8x8xf32>
    %31 = vector.shape_cast %27 : vector<2x8x8xf32> to vector<2x1x8x8xf32>
    %32 = tpu.concatenate %28, %29, %30, %31 in 1 : vector<2x1x8x8xf32>, vector<2x1x8x8xf32>, vector<2x1x8x8xf32>, vector<2x1x8x8xf32> -> vector<2x4x8x8xf32>
    %33 = vector.shape_cast %32 : vector<2x4x8x8xf32> to vector<8x8x8xf32>
    %34 = vector.extract_strided_slice %5 {offsets = [0, 64], sizes = [16, 8], strides = [1, 1]} : vector<16x96xf32> to vector<16x8xf32>
    %35 = vector.shape_cast %34 : vector<16x8xf32> to vector<2x8x8xf32>
    %36 = vector.extract_strided_slice %5 {offsets = [0, 72], sizes = [16, 8], strides = [1, 1]} : vector<16x96xf32> to vector<16x8xf32>
    %37 = vector.shape_cast %36 : vector<16x8xf32> to vector<2x8x8xf32>
    %38 = vector.extract_strided_slice %5 {offsets = [0, 80], sizes = [16, 8], strides = [1, 1]} : vector<16x96xf32> to vector<16x8xf32>
    %39 = vector.shape_cast %38 : vector<16x8xf32> to vector<2x8x8xf32>
    %40 = vector.extract_strided_slice %5 {offsets = [0, 88], sizes = [16, 8], strides = [1, 1]} : vector<16x96xf32> to vector<16x8xf32>
    %41 = vector.shape_cast %40 : vector<16x8xf32> to vector<2x8x8xf32>
    %42 = vector.shape_cast %35 : vector<2x8x8xf32> to vector<2x1x8x8xf32>
    %43 = vector.shape_cast %37 : vector<2x8x8xf32> to vector<2x1x8x8xf32>
    %44 = vector.shape_cast %39 : vector<2x8x8xf32> to vector<2x1x8x8xf32>
    %45 = vector.shape_cast %41 : vector<2x8x8xf32> to vector<2x1x8x8xf32>
    %46 = tpu.concatenate %42, %43, %44, %45 in 1 : vector<2x1x8x8xf32>, vector<2x1x8x8xf32>, vector<2x1x8x8xf32>, vector<2x1x8x8xf32> -> vector<2x4x8x8xf32>
    %47 = vector.shape_cast %46 : vector<2x4x8x8xf32> to vector<8x8x8xf32>
    "tpu.trace_start"() <{level = 10 : i32, message = "gqd,gkd->gqk"}> : () -> ()
    %cst_8 = arith.constant dense<0.000000e+00> : vector<8x8x8xf32>
    %48 = tpu.matmul %19, %33, %cst_8 {dimension_numbers = #tpu.dot_dimension_numbers<[2], [2], [1], [1], [0, 0, 0, 1, 1, 1], [0], [0]>} : vector<8x8x8xf32>, vector<8x8x8xf32>, vector<8x8x8xf32> -> vector<8x8x8xf32>
    "tpu.trace_stop"() : () -> ()
    %cst_9 = arith.constant 0.353553385 : f32
    %49 = vector.broadcast %cst_9 : f32 to vector<8x8x8xf32>
    %50 = arith.mulf %48, %49 : vector<8x8x8xf32>
    %51 = vector.shape_cast %1 : vector<2x8xf32> to vector<2x1x8xf32>
    %52 = vector.shape_cast %51 : vector<2x1x8xf32> to vector<2x1x8xf32>
    %53 = vector.broadcast %52 : vector<2x1x8xf32> to vector<2x4x8xf32>
    %54 = vector.shape_cast %53 : vector<2x4x8xf32> to vector<8x1x8xf32>
    %cst_10 = arith.constant 0.000000e+00 : f32
    %55 = vector.broadcast %cst_10 : f32 to vector<8x1x8xf32>
    %56 = arith.cmpf ogt, %54, %55 : vector<8x1x8xf32>
    %57 = tpu.iota {dimensions = array<i32: 0>} : vector<8x8xi32>
    %58 = tpu.iota {dimensions = array<i32: 1>} : vector<8x8xi32>
    %59 = arith.cmpi sle, %58, %57 : vector<8x8xi32>
    %60 = vector.shape_cast %59 : vector<8x8xi1> to vector<1x8x8xi1>
    %61 = vector.broadcast %56 : vector<8x1x8xi1> to vector<8x8x8xi1>
    %62 = vector.broadcast %60 : vector<1x8x8xi1> to vector<8x8x8xi1>
    %63 = arith.andi %61, %62 : vector<8x8x8xi1>
    %cst_11 = arith.constant 0xFF800000 : f32
    %64 = vector.broadcast %cst_11 : f32 to vector<8x8x8xf32>
    %65 = arith.select %63, %50, %64 : vector<8x8x8xi1>, vector<8x8x8xf32>
    %cst_12 = arith.constant dense<0xFF800000> : vector<8x8xf32>
    %66 = vector.multi_reduction <maximumf>, %65, %cst_12 [2] : vector<8x8x8xf32> to vector<8x8xf32>
    %67 = vector.shape_cast %66 : vector<8x8xf32> to vector<8x8x1xf32>
    %68 = vector.broadcast %67 : vector<8x8x1xf32> to vector<8x8x8xf32>
    %69 = arith.subf %65, %68 : vector<8x8x8xf32>
    %70 = math.exp %69 : vector<8x8x8xf32>
    %cst_13 = arith.constant dense<0.000000e+00> : vector<8x8xf32>
    %71 = vector.multi_reduction <add>, %70, %cst_13 [2] : vector<8x8x8xf32> to vector<8x8xf32>
    %72 = vector.shape_cast %71 : vector<8x8xf32> to vector<8x8x1xf32>
    %73 = tpu.reciprocal %72 {approx = true} : vector<8x8x1xf32> -> vector<8x8x1xf32>
    %74 = vector.broadcast %73 : vector<8x8x1xf32> to vector<8x8x8xf32>
    %75 = arith.mulf %70, %74 : vector<8x8x8xf32>
    %cst_14 = arith.constant 0.000000e+00 : f32
    %76 = vector.shape_cast %56 : vector<8x1x8xi1> to vector<8x1x8xi1>
    %77 = vector.broadcast %76 : vector<8x1x8xi1> to vector<8x8x8xi1>
    %78 = vector.broadcast %cst_14 : f32 to vector<8x8x8xf32>
    %79 = arith.select %77, %75, %78 : vector<8x8x8xi1>, vector<8x8x8xf32>
    %80 = vector.shape_cast %79 : vector<8x8x8xf32> to vector<2x4x8x8xf32>
    %c0_15 = arith.constant 0 : index
    %c0_16 = arith.constant 0 : index
    %c0_17 = arith.constant 0 : index
    %c0_18 = arith.constant 0 : index
    %c0_19 = arith.constant 0 : index
    %81 = vector.load %arg6[%c0_15, %c0_16, %c0_17, %c0_18, %c0_19] : memref<2x2x4x8x8xf32, #tpu.memory_space<vmem>>, vector<1x2x4x8x8xf32>
    %82 = vector.shape_cast %81 : vector<1x2x4x8x8xf32> to vector<2x4x8x8xf32>
    %83 = vector.shape_cast %80 : vector<2x4x8x8xf32> to vector<1x2x4x8x8xf32>
    tpu.vector_store %arg6[%c0_15, %c0_16, %c0_17, %c0_18, %c0_19], %83 {strides = array<i32>} : memref<2x2x4x8x8xf32, #tpu.memory_space<vmem>>, vector<1x2x4x8x8xf32>,
    %84 = vector.shape_cast %65 : vector<8x8x8xf32> to vector<2x4x8x8xf32>
    %c1 = arith.constant 1 : index
    %c0_20 = arith.constant 0 : index
    %c0_21 = arith.constant 0 : index
    %c0_22 = arith.constant 0 : index
    %c0_23 = arith.constant 0 : index
    %85 = vector.load %arg6[%c1, %c0_20, %c0_21, %c0_22, %c0_23] : memref<2x2x4x8x8xf32, #tpu.memory_space<vmem>>, vector<1x2x4x8x8xf32>
    %86 = vector.shape_cast %85 : vector<1x2x4x8x8xf32> to vector<2x4x8x8xf32>
    %87 = vector.shape_cast %84 : vector<2x4x8x8xf32> to vector<1x2x4x8x8xf32>
    tpu.vector_store %arg6[%c1, %c0_20, %c0_21, %c0_22, %c0_23], %87 {strides = array<i32>} : memref<2x2x4x8x8xf32, #tpu.memory_space<vmem>>, vector<1x2x4x8x8xf32>,
    "tpu.trace_start"() <{level = 10 : i32, message = "gqk,gkd->gqd"}> : () -> ()
    %cst_24 = arith.constant dense<0.000000e+00> : vector<8x8x8xf32>
    %88 = tpu.matmul %79, %47, %cst_24 {dimension_numbers = #tpu.dot_dimension_numbers<[2], [1], [1], [2], [0, 0, 0, 1, 1, 2], [0], [0]>} : vector<8x8x8xf32>, vector<8x8x8xf32>, vector<8x8x8xf32> -> vector<8x8x8xf32>
    "tpu.trace_stop"() : () -> ()
    %89 = vector.shape_cast %88 : vector<8x8x8xf32> to vector<2x4x8x8xf32>
    %90 = vector.extract_strided_slice %89 {offsets = [0, 0, 0, 0], sizes = [2, 1, 8, 8], strides = [1, 1, 1, 1]} : vector<2x4x8x8xf32> to vector<2x1x8x8xf32>
    %91 = vector.shape_cast %90 : vector<2x1x8x8xf32> to vector<2x8x8xf32>
    %92 = vector.extract_strided_slice %89 {offsets = [0, 1, 0, 0], sizes = [2, 1, 8, 8], strides = [1, 1, 1, 1]} : vector<2x4x8x8xf32> to vector<2x1x8x8xf32>
    %93 = vector.shape_cast %92 : vector<2x1x8x8xf32> to vector<2x8x8xf32>
    %94 = vector.extract_strided_slice %89 {offsets = [0, 2, 0, 0], sizes = [2, 1, 8, 8], strides = [1, 1, 1, 1]} : vector<2x4x8x8xf32> to vector<2x1x8x8xf32>
    %95 = vector.shape_cast %94 : vector<2x1x8x8xf32> to vector<2x8x8xf32>
    %96 = vector.extract_strided_slice %89 {offsets = [0, 3, 0, 0], sizes = [2, 1, 8, 8], strides = [1, 1, 1, 1]} : vector<2x4x8x8xf32> to vector<2x1x8x8xf32>
    %97 = vector.shape_cast %96 : vector<2x1x8x8xf32> to vector<2x8x8xf32>
    %98 = tpu.concatenate %91, %93, %95, %97 in 2 : vector<2x8x8xf32>, vector<2x8x8xf32>, vector<2x8x8xf32>, vector<2x8x8xf32> -> vector<2x8x32xf32>
    %99 = vector.shape_cast %98 : vector<2x8x32xf32> to vector<16x32xf32>
    %cst_25 = arith.constant dense<0.000000e+00> : vector<16x32xf32>
    %100 = tpu.matmul %99, %3, %cst_25 {dimension_numbers = #tpu.dot_dimension_numbers<[1], [0], [0], [1], [0, 0, 1, 1], [], []>} : vector<16x32xf32>, vector<32x32xf32>, vector<16x32xf32> -> vector<16x32xf32>
    %101 = vector.shape_cast %100 : vector<16x32xf32> to vector<2x8x32xf32>
    %c0_26 = arith.constant 0 : index
    %c0_27 = arith.constant 0 : index
    %c0_28 = arith.constant 0 : index
    %102 = vector.load %arg5[%c0_26, %c0_27, %c0_28] : memref<2x8x32xf32, #tpu.memory_space<vmem>>, vector<2x8x32xf32>
    tpu.vector_store %arg5[%c0_26, %c0_27, %c0_28], %101 {strides = array<i32>} : memref<2x8x32xf32, #tpu.memory_space<vmem>>, vector<2x8x32xf32>,
    return
  }
  func.func @transform_0(%arg0: i32) -> (i32, i32, i32) {
    %c0_i32 = arith.constant 0 : i32
    %c0_i32_0 = arith.constant 0 : i32
    %c0_i32_1 = arith.constant 0 : i32
    %c0_i32_2 = arith.constant 0 : i32
    return %c0_i32, %c0_i32_0, %c0_i32_1 : i32, i32, i32
  }
  func.func @transform_1(%arg0: i32) -> (i32, i32) {
    %c0_i32 = arith.constant 0 : i32
    %c0_i32_0 = arith.constant 0 : i32
    %c0_i32_1 = arith.constant 0 : i32
    return %c0_i32, %c0_i32_0 : i32, i32
  }
  func.func @transform_2(%arg0: i32) -> (i32, i32) {
    %c0_i32 = arith.constant 0 : i32
    %c0_i32_0 = arith.constant 0 : i32
    %c0_i32_1 = arith.constant 0 : i32
    return %c0_i32, %c0_i32_0 : i32, i32
  }
  func.func @transform_3(%arg0: i32) -> (i32, i32) {
    %c0_i32 = arith.constant 0 : i32
    %c0_i32_0 = arith.constant 0 : i32
    %c0_i32_1 = arith.constant 0 : i32
    return %c0_i32, %c0_i32_0 : i32, i32
  }
  func.func @transform_4(%arg0: i32) -> (i32, i32, i32) {
    %c0_i32 = arith.constant 0 : i32
    %c0_i32_0 = arith.constant 0 : i32
    %c0_i32_1 = arith.constant 0 : i32
    %c0_i32_2 = arith.constant 0 : i32
    return %c0_i32, %c0_i32_0, %c0_i32_1 : i32, i32, i32
  }
  func.func @transform_5(%arg0: i32) -> (i32, i32, i32, i32, i32) {
    %c0_i32 = arith.constant 0 : i32
    %c0_i32_0 = arith.constant 0 : i32
    %c0_i32_1 = arith.constant 0 : i32
    %c0_i32_2 = arith.constant 0 : i32
    %c0_i32_3 = arith.constant 0 : i32
    %c0_i32_4 = arith.constant 0 : i32
    return %c0_i32, %c0_i32_0, %c0_i32_1, %c0_i32_2, %c0_i32_3 : i32, i32, i32, i32, i32
  }
}

</mosaic_0001>

<bundles_post_ra>
// kernel: attention_forward.1
= control target key start
LH: loop header
LB: loop body
LE: loop exit
PB: predicated region body
PF: predicated region fallthrough
CT: control target
= control target key end

     0   :  { %11 = vsyncpa [#allocation3], 0  ;;  %s2580_s0 = inlined_call_operand.hbm [shape: f32[2,8,32], index: 0, kind: input, shape index: {}]   ;;  %s2581_s1 = inlined_call_operand.hbm [shape: f32[2,8], index: 1, kind: input, shape index: {}]   ;;  %s2582_s2 = inlined_call_operand.hbm [shape: f32[32,96], index: 2, kind: input, shape index: {}]   ;;  %s2583_s3 = inlined_call_operand.hbm [shape: f32[32,32], index: 3, kind: input, shape index: {}]   ;;  %s2584_s4 = inlined_call_operand.hbm [shape: f32[2,8,32], index: 4, kind: output, shape index: {0}]   ;;  %s2585_s5 = inlined_call_operand.vmem [shape: f32[2,2,4,8,8], index: 5, kind: output, shape index: {1}]  }
   0x1   :  { %12 = vsyncpa [#allocation6], 0 }
   0x2   :  { %13 = vsyncpa [#allocation9], 0 }
   0x3   :  { %14 = vsyncpa [#allocation4], 0  ;;  %s2163_s18 = smov [#allocation5]   ;;  %s2164_s20 = smov [#allocation2]  }
   0x4   :  { %s33_s19 = sshll.u32 %s2163_s18, 4  ;;  %s20_s21 = sshll.u32 %s2164_s20, 4  ;;  %s34_s19 = int_to_ptr.vmem [resolvable:$true] %s33_s19  ;;  %s21_s21 = int_to_ptr.vmem [resolvable:$true] %s20_s21 }
   0x5   :  { %s2063_s22 = scalar_lea.vmem %s34_s19, 32  ;;  %p2068_p1 = scmp.lt.s32.totalorder %s34_s19, %s34_s19 }
   0x6   :  { %p2064_p0 = scmp.ne.s32.totalorder %s34_s19, %s2063_s22  ;;  %p2069_p2 = scmp.lt.s32.totalorder %s2063_s22, %s2063_s22 }
   0x8   :  { %p2070_p3 = por %p2069_p2, %p2068_p1 }
   0xa   :  { %p2071_p4 = pnand %p2070_p3, %p2064_p0 }
   0xc   :  { %2074 = shalt.err (!%p2071_p4)
}
   0xd   :  { %36 = dma.hbm_to_vmem [thread:$0]  %s2581_s1, 32, %s34_s19, [#allocation6]  }
   0xe   :  { %s2083_s25 = scalar_lea.vmem %s21_s21, 256  ;;  %p2088_p6 = scmp.lt.s32.totalorder %s21_s21, %s21_s21 }
   0xf   :  { %p2084_p5 = scmp.ne.s32.totalorder %s21_s21, %s2083_s25  ;;  %p2089_p7 = scmp.lt.s32.totalorder %s2083_s25, %s2083_s25 }
  0x11   :  { %p2090_p8 = por %p2089_p7, %p2088_p6 }
  0x13   :  { %p2091_p9 = pnand %p2090_p8, %p2084_p5 }
  0x15   :  { %2094 = shalt.err (!%p2091_p9)
}
  0x16   :  { %s2165_s26 = smov 128   ;;  %s2166_s27 = smov 8  }
  0x17   :  { %26 = dma.hbm_to_vmem [thread:$0]  %s2580_s0, 256, %s21_s21, [#allocation3], %s2165_s26, %s2165_s26, %s2166_s27  }
  0x18   :  { %s2167_s30 = smov [#allocation7]   ;;  %s2168_s7 = smov [#allocation8]  }
  0x19   :  { %s42_s6 = sshll.u32 %s2167_s30, 4  ;;  %s54_s1 = sshll.u32 %s2168_s7, 4  ;;  %s43_s6 = int_to_ptr.vmem [resolvable:$true] %s42_s6  ;;  %s55_s1 = int_to_ptr.vmem [resolvable:$true] %s54_s1 }
  0x1a   :  { %s2103_s8 = scalar_lea.vmem %s43_s6, 512  ;;  %p2108_p11 = scmp.lt.s32.totalorder %s43_s6, %s43_s6 }
  0x1b   :  { %p2104_p10 = scmp.ne.s32.totalorder %s43_s6, %s2103_s8  ;;  %p2109_p12 = scmp.lt.s32.totalorder %s2103_s8, %s2103_s8 }
  0x1d   :  { %p2110_p13 = por %p2109_p12, %p2108_p11 }
  0x1f   :  { %p2111_p0 = pnand %p2110_p13, %p2104_p10 }
  0x21   :  { %2114 = shalt.err (!%p2111_p0)
}
  0x22   :  { %48 = dma.hbm_to_vmem [thread:$0]  %s2582_s2, 512, %s43_s6, [#allocation6], %s2165_s26, %s2165_s26, %s2166_s27  }
  0x23   :  { %s2123_s0 = scalar_lea.vmem %s55_s1, 512  ;;  %p2128_p2 = scmp.lt.s32.totalorder %s55_s1, %s55_s1 }
  0x24   :  { %p2124_p1 = scmp.ne.s32.totalorder %s55_s1, %s2123_s0  ;;  %p2129_p3 = scmp.lt.s32.totalorder %s2123_s0, %s2123_s0 }
  0x26   :  { %p2130_p4 = por %p2129_p3, %p2128_p2 }
  0x28   :  { %p2131_p5 = pnand %p2130_p4, %p2124_p1 }
  0x2a   :  { %2134 = shalt.err (!%p2131_p5)
}
  0x2b   :  { %60 = dma.hbm_to_vmem [thread:$0]  %s2583_s3, 512, %s55_s1, [#allocation9], %s2165_s26, %s2165_s26, %s2166_s27  }
  0x2c   :  { %2155 = dma.done.wait [#allocation3], 256  }
  0x2d   :  { %2156 = vsyncadd [#allocation3], 4294967040 }
  0x2e   :  { %2157 = dma.done.wait [#allocation6], 544  }
  0x2f   :  { %2158 = vsyncadd [#allocation6], 4294966752 }
  0x30   :  { %2159 = dma.done.wait [#allocation9], 512  }
  0x31   :  { %2160 = vsyncadd [#allocation9], 4294966784  ;;  %vm84_vm0 = vcmask 261120   ;;  %v79_v0 = vld [vmem:[#allocation7 + $0x18] sm:$0xff]  ;;  %v78_v1 = vld [vmem:[#allocation7 + $0x10] sm:$0xff]  ;;  %v2169_v6 = vmov 0.0   ;;  %v809_v25 = vlaneseq }
  0x32   :  { %1903 = vmatprep.subr.mxu0 %v79_v0  ;;  %v73_v2 = vld [vmem:[#allocation2] sm:$0xff]  ;;  %v76_v4 = vld [vmem:[#allocation7] sm:$0xff]  ;;  %v74_v5 = vld [vmem:[#allocation2 + $0x8] sm:$0xff]  ;;  %1914 = vmatprep.subr.mxu1 %v2169_v6  ;;  %s2170_s2 = smov 104   ;;  %s2171_s3 = smov 120   ;;  %vm2172_vm1 = vmmov 0  }
  0x33   :  { %1904 = vmatpush3.msra.mxu0 %v79_v0  ;;  %v77_v3 = vld [vmem:[#allocation7 + $0x8] sm:$0xff]  ;;  %1911 = vmatprep.mubr.msk.f32.mxu0 %vm84_vm0, %v73_v2  ;;  %s2173_s13 = smov 112   ;;  %s2174_s14 = smov 96   ;;  %vm182_vm2 = vcmask 64512   ;;  %v2175_v23 = vmov 1966171168  }
  0x34   :  { %1905 = vmatprep.subr.mxu0 %v78_v1  ;;  %1916 = vmatprep.mubr.msk.f32.mxu1 %vm2172_vm1, %v2169_v6  ;;  %v807_v24 = vunpack.c.l.s4 %v2175_v23  ;;  %v810_v27 = vshrl.u32 %v809_v25, 7  ;;  %v1840_v29 = vld.sshfl [vmem:[#allocation5] sm:$0x11 pattern:$0x75316420]  ;;  %v2176_v35 = vmov 0  }
  0x35   :  { %1906 = vmatpush3.msra.mxu0 %v78_v1  ;;  %v895_v37 = vand.u32 127, %v809_v25  ;;  %v805_v46 = vcombine.high %v1840_v29, %v1840_v29  ;;  %s2177_s1 = smov 64   ;;  %s2179_s21 = smov 24  }
  0x36   :  { %1907 = vmatprep.subr.mxu0 %v77_v3  ;;  %v808_v26 = vunpack.c.0.s8 %v807_v24  ;;  %v2318_v31 = vsub.s32 0, %v810_v27  ;;  %s2180_s22 = smov [#allocation10]  }
  0x37   :  { %1908 = vmatpush3.msra.mxu0 %v77_v3  ;;  %vm2322_vm4 = vcmp.le.s32.totalorder %v895_v37, %v810_v27  ;;  %s1804_s23 = sshll.u32 %s2180_s22, 4  ;;  %s1805_s23 = int_to_ptr.vmem [resolvable:$true] %s1804_s23 }
  0x38   :  { %1909 = vmatprep.subr.mxu0 %v76_v4  ;;  %v811_v28 = vsub.s32 %v808_v26, %v810_v27  ;;  %s2135_s24 = scalar_lea.vmem %s1805_s23, 256  ;;  %p2140_p7 = scmp.lt.s32.totalorder %s1805_s23, %s1805_s23 }
  0x39   :  { %1910 = vmatpush3.msra.mxu0 %v76_v4  ;;  %p2136_p6 = scmp.ne.s32.totalorder %s1805_s23, %s2135_s24  ;;  %p2141_p8 = scmp.lt.s32.totalorder %s2135_s24, %s2135_s24 }
  0x3a   :  { %1912 = vmatmul.mubr.msk.f32.vlgmr.msra.gmra.mxu0 %vm84_vm0, %v74_v5  ;;  %1934 = vmatprep.subr.mxu0 %v2169_v6  ;;  %v812_v30 = vrot.slane %v1840_v29, %v811_v28  ;;  %v819_v48 = vrot.slane %v805_v46, %v811_v28 }
  0x3b   :  { %1936 = vmatprep.mubr.msk.f32.mxu0 %vm2172_vm1, %v2169_v6  ;;  %p2142_p9 = por %p2141_p8, %p2140_p7 }
  0x3c   :  { %v823_v32 = vrot.slane %v812_v30, %v2318_v31  ;;  %v827_v50 = vrot.slane %v819_v48, %v2318_v31 }
  0x3d   :  { %p2143_p10 = pnand %p2142_p9, %p2136_p6 }
  0x3e   :  { %v834_v33 = vrot.slane %v823_v32, %v811_v28  ;;  %v858_v52 = vrot.slane %v827_v50, %v811_v28 }
  0x40   :  { %v842_v34 = vrot.slane %v834_v33, %v811_v28  ;;  %v835_v47 = vcombine.high %v834_v33, %v834_v33  ;;  %v859_v55 = vcombine.high %v858_v52, %v858_v52  ;;  %v866_v56 = vrot.slane %v858_v52, %v811_v28 }
  0x42   :  { %vm884_vm3 = vcmp.gt.f32.partialorder %v842_v34, 0.0  ;;  %v849_v49 = vrot.slane %v835_v47, %v811_v28  ;;  %v850_v51 = vcombine.high %v842_v34, %v842_v34  ;;  %v873_v59 = vrot.slane %v859_v55, %v811_v28 }
  0x43   :  { %v897_v36 = vsel %vm884_vm3, 1, %v2176_v35  ;;  %vm888_vm10 = vcmp.gt.f32.partialorder %v866_v56, 0.0  ;;  %v874_v60 = vcombine.high %v866_v56, %v866_v56 }
  0x44   :  { %v908_v38 = vrot.slane %v897_v36, %v2318_v31  ;;  %vm885_vm7 = vcmp.gt.f32.partialorder %v849_v49, 0.0  ;;  %v851_v54 = vcombine.high %v849_v49, %v849_v49  ;;  %vm886_vm8 = vcmp.gt.f32.partialorder %v850_v51, 0.0 }
  0x45   :  { %v898_v53 = vsel %vm885_vm7, 1, %v2176_v35  ;;  %v899_v58 = vsel %vm886_vm8, 1, %v2176_v35  ;;  %v901_v0 = vsel %vm888_vm10, 1, %v2176_v35  ;;  %vm889_vm12 = vcmp.gt.f32.partialorder %v873_v59, 0.0 }
  0x46   :  { %vm2326_vm5 = vcmp.eq.s32.totalorder %v908_v38, 1  ;;  %v912_v57 = vrot.slane %v898_v53, %v2318_v31  ;;  %vm887_vm9 = vcmp.gt.f32.partialorder %v851_v54, 0.0  ;;  %v916_v62 = vrot.slane %v899_v58, %v2318_v31 }
  0x47   :  { %vm947_vm6 = vmand %vm2326_vm5, %vm2322_vm4  ;;  %v900_v63 = vsel %vm887_vm9, 1, %v2176_v35  ;;  %vm890_vm13 = vcmp.gt.f32.partialorder %v874_v60, 0.0  ;;  %v875_v1 = vcombine.high %v873_v59, %v873_v59 }
  0x48   :  { %vm2345_vm11 = vcmp.eq.s32.totalorder %v912_v57, 1  ;;  %v920_v3 = vrot.slane %v900_v63, %v2318_v31  ;;  %vm2355_vm15 = vcmp.eq.s32.totalorder %v916_v62, 1 }
  0x49   :  { %vm948_vm14 = vmand %vm2345_vm11, %vm2322_vm4  ;;  %vm891_vm3 = vcmp.gt.f32.partialorder %v875_v1, 0.0 }
  0x4a   :  { %vm2373_vm7 = vcmp.eq.s32.totalorder %v920_v3, 1  ;;  %v904_v28 = vsel %vm891_vm3, 1, %v2176_v35 }
  0x4b   :  { %vm950_vm9 = vmand %vm2373_vm7, %vm2322_vm4  ;;  %v936_v38 = vrot.slane %v904_v28, %v2318_v31 }
  0xfa   :  { %v2236_v7 = vpop.f32.mrf.mxu0 }
  0xfc   :  { %v2238_v8 = vpop.f32.mrf.mxu0 }
  0xfd   :  { %176 = vrot.lane.b32.xlu1 %v2238_v8, %s2170_s2  ;;  %168 = vrot.lane.b32.xlu0 %v2238_v8, %s2171_s3 }
 0x101   :  { %170 = vrot.lane.b32.xlu1 %v2236_v7, %s2171_s3  ;;  %172 = vrot.lane.b32.xlu0 %v2238_v8, %s2173_s13 }
 0x105   :  { %178 = vrot.lane.b32.xlu1 %v2236_v7, %s2170_s2  ;;  %174 = vrot.lane.b32.xlu0 %v2236_v7, %s2173_s13 }
 0x109   :  { %180 = vrot.lane.b32.xlu0 %v2238_v8, %s2174_s14 }
 0x16f   :  { %v2251_v9 = vpop.permute.xlu1 %176  ;;  %v2253_v10 = vpop.permute.xlu0 %168 }
 0x170   :  { %257 = vrot.lane.b32.xlu1 %v2253_v10, %s2174_s14 }
 0x173   :  { %v2256_v11 = vpop.permute.xlu0 %172  ;;  %v2260_v12 = vpop.permute.xlu1 %170 }
 0x174   :  { %409 = vrot.lane.b32.xlu1 %v2251_v9, %s2174_s14  ;;  %333 = vrot.lane.b32.xlu0 %v2256_v11, %s2174_s14 }
 0x177   :  { %v2262_v13 = vpop.permute.xlu0 %174  ;;  %v2266_v14 = vpop.permute.xlu1 %178 }
 0x178   :  { %561 = vrot.lane.b32.xlu1 %v2260_v12, %s2174_s14  ;;  %485 = vrot.lane.b32.xlu0 %v2236_v7, %s2174_s14 }
 0x17b   :  { %v181_v15 = vpop.permute.xlu0 %180 }
 0x17c   :  { %713 = vrot.lane.b32.xlu1 %v2266_v14, %s2174_s14  ;;  %637 = vrot.lane.b32.xlu0 %v2262_v13, %s2174_s14 }
 0x17d   :  { %1915 = vmatpush3.xpose.msk.msra.mxu1 %vm182_vm2, %v181_v15  ;;  %v924_v15 = vrot.slane %v901_v0, %v2318_v31 }
 0x17e   :  { %1919 = vmatprep.subr.mxu1 %v2169_v6 }
 0x17f   :  { %vm2378_vm8 = vcmp.eq.s32.totalorder %v924_v15, 1 }
 0x180   :  { %1917 = vmatmul.mubr.msk.f32.vlgmr.msra.gmra.mxu1 %vm182_vm2, %v2238_v8  ;;  %vm951_vm10 = vmand %vm2378_vm8, %vm2322_vm4 }
 0x181   :  { %1921 = vmatprep.mubr.msk.f32.mxu1 %vm2172_vm1, %v2169_v6 }
 0x1e2   :  { %v258_v16 = vpop.permute.xlu1 %257 }
 0x1e3   :  { %1920 = vmatpush3.xpose.msk.msra.mxu1 %vm182_vm2, %v258_v16  ;;  %v902_v16 = vsel %vm889_vm12, 1, %v2176_v35 }
 0x1e4   :  { %1924 = vmatprep.subr.mxu1 %v2169_v6  ;;  %v928_v23 = vrot.slane %v902_v16, %v2318_v31 }
 0x1e6   :  { %v410_v17 = vpop.permute.xlu1 %409  ;;  %1922 = vmatmul.mubr.msk.f32.vlgmr.msra.gmra.mxu1 %vm182_vm2, %v2253_v10  ;;  %v334_v18 = vpop.permute.xlu0 %333  ;;  %vm2400_vm12 = vcmp.eq.s32.totalorder %v928_v23, 1 }
 0x1e7   :  { %1925 = vmatpush3.xpose.msk.msra.mxu1 %vm182_vm2, %v334_v18  ;;  %1926 = vmatprep.mubr.msk.f32.mxu1 %vm2172_vm1, %v2169_v6  ;;  %v903_v18 = vsel %vm890_vm13, 1, %v2176_v35 }
 0x1e8   :  { %1929 = vmatprep.subr.mxu1 %v2169_v6  ;;  %v932_v26 = vrot.slane %v903_v18, %v2318_v31 }
 0x1ea   :  { %1927 = vmatmul.mubr.msk.f32.vlgmr.msra.gmra.mxu1 %vm182_vm2, %v2256_v11  ;;  %v486_v19 = vpop.permute.xlu0 %485  ;;  %v562_v20 = vpop.permute.xlu1 %561  ;;  %vm2404_vm13 = vcmp.eq.s32.totalorder %v932_v26, 1 }
 0x1eb   :  { %1930 = vmatpush3.xpose.msk.msra.mxu1 %vm182_vm2, %v410_v17  ;;  %1935 = vmatpush3.xpose.msk.msra.mxu0 %vm182_vm2, %v486_v19  ;;  %vm953_vm3 = vmand %vm2404_vm13, %vm2322_vm4 }
 0x1ec   :  { %1931 = vmatprep.mubr.msk.f32.mxu1 %vm2172_vm1, %v2169_v6  ;;  %1939 = vmatprep.subr.mxu1 %v2169_v6 }
 0x1ed   :  { %1944 = vmatprep.subr.mxu0 %v2169_v6 }
 0x1ee   :  { %1932 = vmatmul.mubr.msk.f32.vlgmr.msra.gmra.mxu1 %vm182_vm2, %v2251_v9  ;;  %1937 = vmatmul.mubr.msk.f32.vlgmr.msra.gmra.mxu0 %vm182_vm2, %v2236_v7  ;;  %v638_v21 = vpop.permute.xlu0 %637  ;;  %v714_v22 = vpop.permute.xlu1 %713 }
 0x1ef   :  { %1940 = vmatpush3.xpose.msk.msra.mxu1 %vm182_vm2, %v562_v20  ;;  %1945 = vmatpush3.xpose.msk.msra.mxu0 %vm182_vm2, %v638_v21 }
 0x1f0   :  { %1941 = vmatprep.mubr.msk.f32.mxu1 %vm2172_vm1, %v2169_v6  ;;  %1946 = vmatprep.mubr.msk.f32.mxu0 %vm2172_vm1, %v2169_v6 }
 0x1f1   :  { %1949 = vmatprep.subr.mxu1 %v2169_v6  ;;  %1954 = vmatprep.subr.mxu0 %v2169_v6 }
 0x1f2   :  { %1942 = vmatmul.mubr.msk.f32.vlgmr.msra.gmra.mxu1 %vm182_vm2, %v2260_v12  ;;  %1947 = vmatmul.mubr.msk.f32.vlgmr.msra.gmra.mxu0 %vm182_vm2, %v2262_v13 }
 0x1f3   :  { %1950 = vmatpush3.xpose.msk.msra.mxu1 %vm182_vm2, %v714_v22  ;;  %1951 = vmatprep.mubr.msk.f32.mxu1 %vm2172_vm1, %v2169_v6 }
 0x1f4   :  { %1959 = vmatprep.subr.mxu1 %v2169_v6  ;;  %1956 = vmatprep.mubr.msk.f32.mxu0 %vm2172_vm1, %v2169_v6 }
 0x1f6   :  { %1952 = vmatmul.mubr.msk.f32.vlgmr.msra.gmra.mxu1 %vm182_vm2, %v2266_v14 }
 0x1f7   :  { %1961 = vmatprep.mubr.msk.f32.mxu1 %vm2172_vm1, %v2169_v6 }
 0x240   :  { %v253_v41 = vpop.f32.mrf.mxu1 }
 0x241   :  { %v789_v42 = vmul.f32 0.35355338, %v253_v41 }
 0x242   :  { %v1918_v43 = vpop.f32.mrf.mxu1 }
 0x243   :  { %v2334_v44 = vsel %vm947_vm6, %v789_v42, -inf  ;;  %vm949_vm6 = vmand %vm2355_vm15, %vm2322_vm4 }
 0x244   :  { %1841 = vst.msk [vmem:[%s2585_s5 + $0x40] sm:$0xff] %vm182_vm2, %v2334_v44  ;;  %v963_v45 = vsel %vm182_vm2, %v2334_v44, -inf }
 0x245   :  { %964 = vmax.xlane.f32.xlu0 %v963_v45 }
 0x2a6   :  { %v329_v2 = vpop.f32.mrf.mxu1 }
 0x2a7   :  { %v790_v4 = vmul.f32 0.35355338, %v329_v2 }
 0x2a8   :  { %v1923_v17 = vpop.f32.mrf.mxu1 }
 0x2a9   :  { %v2360_v19 = vsel %vm948_vm14, %v790_v4, -inf  ;;  %vm952_vm14 = vmand %vm2400_vm12, %vm2322_vm4 }
 0x2aa   :  { %1842 = vst.msk [vmem:[%s2585_s5 + $0x48] sm:$0xff] %vm182_vm2, %v2360_v19  ;;  %v405_v20 = vpop.f32.mrf.mxu1  ;;  %v966_v21 = vsel %vm182_vm2, %v2360_v19, -inf }
 0x2ab   :  { %v791_v24 = vmul.f32 0.35355338, %v405_v20  ;;  %967 = vmax.xlane.f32.xlu1 %v966_v21 }
 0x2ac   :  { %v1928_v27 = vpop.f32.mrf.mxu1 }
 0x2ad   :  { %v2383_v29 = vsel %vm949_vm6, %v791_v24, -inf  ;;  %vm2427_vm6 = vcmp.eq.s32.totalorder %v936_v38, 1 }
 0x2ae   :  { %1843 = vst.msk [vmem:[%s2585_s5 + $0x50] sm:$0xff] %vm182_vm2, %v2383_v29  ;;  %v481_v30 = vpop.f32.mrf.mxu1  ;;  %v557_v32 = vpop.f32.mrf.mxu0  ;;  %v969_v33 = vsel %vm182_vm2, %v2383_v29, -inf }
 0x2af   :  { %v792_v35 = vmul.f32 0.35355338, %v481_v30  ;;  %v793_v36 = vmul.f32 0.35355338, %v557_v32  ;;  %970 = vmax.xlane.f32.xlu0 %v969_v33 }
 0x2b0   :  { %v1933_v41 = vpop.f32.mrf.mxu1  ;;  %v1938_v42 = vpop.f32.mrf.mxu0 }
 0x2b1   :  { %v958_v43 = vsel %vm950_vm9, %v792_v35, -inf  ;;  %v959_v45 = vsel %vm951_vm10, %v793_v36, -inf  ;;  %vm954_vm9 = vmand %vm2427_vm6, %vm2322_vm4  ;;  %vm1713_vm4 = vcmask 195584  }
 0x2b2   :  { %1844 = vst.msk [vmem:[%s2585_s5 + $0x58] sm:$0xff] %vm182_vm2, %v958_v43  ;;  %1845 = vst.msk [vmem:[%s2585_s5 + $0x60] sm:$0xff] %vm182_vm2, %v959_v45  ;;  %v633_v31 = vpop.f32.mrf.mxu1  ;;  %v709_v46 = vpop.f32.mrf.mxu0  ;;  %v972_v47 = vsel %vm182_vm2, %v958_v43, -inf  ;;  %v975_v48 = vsel %vm182_vm2, %v959_v45, -inf }
 0x2b3   :  { %v794_v49 = vmul.f32 0.35355338, %v633_v31  ;;  %v795_v50 = vmul.f32 0.35355338, %v709_v46  ;;  %973 = vmax.xlane.f32.xlu0 %v972_v47  ;;  %976 = vmax.xlane.f32.xlu1 %v975_v48 }
 0x2b4   :  { %v1943_v52 = vpop.f32.mrf.mxu1  ;;  %v1948_v53 = vpop.f32.mrf.mxu0 }
 0x2b5   :  { %v960_v54 = vsel %vm952_vm14, %v794_v49, -inf  ;;  %v961_v55 = vsel %vm953_vm3, %v795_v50, -inf }
 0x2b6   :  { %1846 = vst.msk [vmem:[%s2585_s5 + $0x68] sm:$0xff] %vm182_vm2, %v960_v54  ;;  %1847 = vst.msk [vmem:[%s2585_s5 + $0x70] sm:$0xff] %vm182_vm2, %v961_v55  ;;  %v785_v56 = vpop.f32.mrf.mxu1  ;;  %v978_v57 = vsel %vm182_vm2, %v960_v54, -inf  ;;  %v981_v58 = vsel %vm182_vm2, %v961_v55, -inf }
 0x2b7   :  { %v796_v59 = vmul.f32 0.35355338, %v785_v56  ;;  %979 = vmax.xlane.f32.xlu0 %v978_v57  ;;  %982 = vmax.xlane.f32.xlu1 %v981_v58 }
 0x2b8   :  { %v1953_v60 = vpop.f32.mrf.mxu1 }
 0x2b9   :  { %v962_v62 = vsel %vm954_vm9, %v796_v59, -inf }
 0x2ba   :  { %1848 = vst.msk [vmem:[%s2585_s5 + $0x78] sm:$0xff] %vm182_vm2, %v962_v62  ;;  %v984_v63 = vsel %vm182_vm2, %v962_v62, -inf }
 0x2bb   :  { %985 = vmax.xlane.f32.xlu0 %v984_v63 }
 0x2c8   :  { %1076 = vrot.lane.b32.xlu1 %v2238_v8, %s2177_s1 }
 0x2cc   :  { %1228 = vrot.lane.b32.xlu1 %v2256_v11, %s2177_s1 }
 0x2ce   :  { %v965_v39 = vpop.xlane.xlu0 %964 }
 0x2cf   :  { %v987_v8 = vsub.f32 %v2334_v44, %v965_v39 }
 0x2d0   :  { %1304 = vrot.lane.b32.xlu1 %v2251_v9, %s2177_s1 }
 0x2d1   :  { %1152 = vrot.lane.b32.xlu0 %v2253_v10, %s2177_s1  ;;  %v995_v9 = vmul.f32 1.442695, %v987_v8 }
 0x2d5   :  { %1380 = vrot.lane.b32.xlu0 %v2236_v7, %s2177_s1 }
 0x334   :  { %v968_v0 = vpop.xlane.xlu1 %967 }
 0x335   :  { %v988_v1 = vsub.f32 %v2360_v19, %v968_v0 }
 0x337   :  { %v997_v2 = vmul.f32 1.442695, %v988_v1 }
 0x338   :  { %v971_v3 = vpop.xlane.xlu0 %970 }
 0x339   :  { %2023 = vpow2.f32 %v997_v2  ;;  %v989_v19 = vsub.f32 %v2383_v29, %v971_v3 }
 0x33b   :  { %v999_v30 = vmul.f32 1.442695, %v989_v19 }
 0x33c   :  { %v977_v4 = vpop.xlane.xlu1 %976  ;;  %v974_v11 = vpop.xlane.xlu0 %973 }
 0x33d   :  { %v991_v15 = vsub.f32 %v959_v45, %v977_v4  ;;  %v990_v16 = vsub.f32 %v958_v43, %v974_v11 }
 0x33f   :  { %v1003_v17 = vmul.f32 1.442695, %v991_v15  ;;  %v1001_v18 = vmul.f32 1.442695, %v990_v16 }
 0x340   :  { %v983_v10 = vpop.xlane.xlu1 %982  ;;  %v980_v20 = vpop.xlane.xlu0 %979 }
 0x341   :  { %2025 = vpow2.f32 %v1003_v17  ;;  %v993_v7 = vsub.f32 %v961_v55, %v983_v10  ;;  %v992_v21 = vsub.f32 %v960_v54, %v980_v20 }
 0x342   :  { %2027 = vpow2.f32 %v1001_v18 }
 0x343   :  { %2029 = vpow2.f32 %v995_v9  ;;  %v1007_v23 = vmul.f32 1.442695, %v993_v7  ;;  %v1005_v24 = vmul.f32 1.442695, %v992_v21 }
 0x344   :  { %v1077_v26 = vpop.permute.xlu1 %1076  ;;  %v986_v44 = vpop.xlane.xlu0 %985 }
 0x345   :  { %v994_v27 = vsub.f32 %v962_v62, %v986_v44  ;;  %1955 = vmatpush3.msra.mxu0 %v1077_v26  ;;  %2031 = vpow2.f32 %v1005_v24 }
 0x346   :  { %v2024_v28 = vpop.eup %2023  ;;  %1964 = vmatprep.subr.mxu0 %v2169_v6  ;;  %2033 = vpow2.f32 %v1007_v23 }
 0x347   :  { %v1009_v32 = vmul.f32 1.442695, %v994_v27  ;;  %v1014_v33 = vsel %vm182_vm2, %v2024_v28, 0.0  ;;  %v83_v27 = vld [vmem:[#allocation8 + $0x18] sm:$0xff] }
 0x348   :  { %1015 = vadd.xlane.f32.xlu0 %v1014_v33  ;;  %v1153_v35 = vpop.permute.xlu0 %1152  ;;  %v1229_v54 = vpop.permute.xlu1 %1228 }
 0x349   :  { %2035 = vpow2.f32 %v1009_v32  ;;  %1960 = vmatpush3.msra.mxu1 %v1153_v35  ;;  %v80_v35 = vld [vmem:[#allocation8] sm:$0xff] }
 0x34a   :  { %1969 = vmatprep.subr.mxu1 %v2169_v6  ;;  %2037 = vpow2.f32 %v999_v30  ;;  %v82_v30 = vld [vmem:[#allocation8 + $0x10] sm:$0xff] }
 0x34c   :  { %v2488_v53 = vpop.permute.xlu0 %1380  ;;  %v1305_v56 = vpop.permute.xlu1 %1304 }
 0x34e   :  { %v2026_v29 = vpop.eup %2025 }
 0x34f   :  { %v2028_v36 = vpop.eup %2027  ;;  %v1023_v38 = vsel %vm182_vm2, %v2026_v29, 0.0 }
 0x350   :  { %v2030_v41 = vpop.eup %2029  ;;  %1024 = vadd.xlane.f32.xlu1 %v1023_v38  ;;  %v1020_v42 = vsel %vm182_vm2, %v2028_v36, 0.0 }
 0x351   :  { %1021 = vadd.xlane.f32.xlu0 %v1020_v42  ;;  %v1011_v45 = vsel %vm182_vm2, %v2030_v41, 0.0 }
 0x352   :  { %v2032_v43 = vpop.eup %2031 }
 0x353   :  { %v2469_v31 = vpop.eup %2033  ;;  %v1026_v46 = vsel %vm182_vm2, %v2032_v43, 0.0 }
 0x354   :  { %1012 = vadd.xlane.f32.xlu1 %v1011_v45  ;;  %v1029_v48 = vsel %vm182_vm2, %v2469_v31, 0.0 }
 0x355   :  { %1027 = vadd.xlane.f32.xlu0 %v1026_v46 }
 0x356   :  { %v2472_v47 = vpop.eup %2035 }
 0x357   :  { %v1032_v49 = vsel %vm182_vm2, %v2472_v47, 0.0  ;;  %v2478_v50 = vpop.eup %2037 }
 0x358   :  { %1030 = vadd.xlane.f32.xlu1 %v1029_v48  ;;  %v1017_v52 = vsel %vm182_vm2, %v2478_v50, 0.0 }
 0x359   :  { %1033 = vadd.xlane.f32.xlu0 %v1032_v49 }
 0x35c   :  { %1018 = vadd.xlane.f32.xlu1 %v1017_v52 }
 0x36d   :  { %1456 = vrot.lane.b32.xlu1 %v2260_v12, %s2177_s1 }
 0x36f   :  { %1532 = vrot.lane.b32.xlu0 %v2262_v13, %s2177_s1 }
 0x371   :  { %1608 = vrot.lane.b32.xlu1 %v2266_v14, %s2177_s1 }
 0x3d1   :  { %v1016_v55 = vpop.xlane.xlu0 %1015 }
 0x3d2   :  { %2039 = vrcp.f32 %v1016_v55 }
 0x3d9   :  { %v1025_v57 = vpop.xlane.xlu1 %1024 }
 0x3da   :  { %2041 = vrcp.f32 %v1025_v57  ;;  %v1022_v58 = vpop.xlane.xlu0 %1021 }
 0x3db   :  { %2043 = vrcp.f32 %v1022_v58 }
 0x3dd   :  { %v1013_v59 = vpop.xlane.xlu1 %1012 }
 0x3de   :  { %2045 = vrcp.f32 %v1013_v59  ;;  %v1028_v60 = vpop.xlane.xlu0 %1027 }
 0x3df   :  { %v2040_v12 = vpop.eup %2039  ;;  %2047 = vrcp.f32 %v1028_v60 }
 0x3e0   :  { %v1044_v62 = vmul.f32 %v2040_v12, %v2024_v28 }
 0x3e1   :  { %v1031_v13 = vpop.xlane.xlu1 %1030 }
 0x3e2   :  { %2049 = vrcp.f32 %v1031_v13  ;;  %v1034_v63 = vpop.xlane.xlu0 %1033  ;;  %v1052_v14 = vsel %vm2345_vm11, %v1044_v62, 0.0 }
 0x3e3   :  { %2051 = vrcp.f32 %v1034_v63  ;;  %1060 = vst.msk [vmem:[%s2585_s5 + $0x8] sm:$0xff] %vm182_vm2, %v1052_v14  ;;  %1962 = vmatmul.mubr.msk.f32.vlgmr.msra.gmra.mxu1 %vm182_vm2, %v1052_v14 }
 0x3e4   :  { %1970 = vmatpush3.msra.mxu1 %v1305_v56  ;;  %1971 = vmatprep.mubr.msk.f32.mxu1 %vm2172_vm1, %v2169_v6 }
 0x3e5   :  { %v1019_v39 = vpop.xlane.xlu1 %1018  ;;  %1979 = vmatprep.subr.mxu1 %v2169_v6 }
 0x3e6   :  { %2053 = vrcp.f32 %v1019_v39  ;;  %v1533_v51 = vpop.permute.xlu0 %1532 }
 0x3e7   :  { %v2042_v0 = vpop.eup %2041 }
 0x3e8   :  { %v2044_v1 = vpop.eup %2043  ;;  %v1047_v61 = vmul.f32 %v2042_v0, %v2026_v29 }
 0x3e9   :  { %v1457_v2 = vpop.permute.xlu1 %1456  ;;  %v1046_v3 = vmul.f32 %v2044_v1, %v2028_v36 }
 0x3ea   :  { %v1055_v8 = vsel %vm2378_vm8, %v1047_v61, 0.0 }
 0x3eb   :  { %v2046_v4 = vpop.eup %2045  ;;  %v1054_v11 = vsel %vm2373_vm7, %v1046_v3, 0.0  ;;  %1063 = vst.msk [vmem:[%s2585_s5 + $0x20] sm:$0xff] %vm182_vm2, %v1055_v8 }
 0x3ec   :  { %v2048_v15 = vpop.eup %2047  ;;  %1062 = vst.msk [vmem:[%s2585_s5 + $0x18] sm:$0xff] %vm182_vm2, %v1054_v11  ;;  %1972 = vmatmul.mubr.msk.f32.vlgmr.msra.gmra.mxu1 %vm182_vm2, %v1054_v11  ;;  %v1043_v16 = vmul.f32 %v2046_v4, %v2030_v41 }
 0x3ed   :  { %1980 = vmatpush3.msra.mxu1 %v1457_v2  ;;  %1981 = vmatprep.mubr.msk.f32.mxu1 %vm2172_vm1, %v2169_v6  ;;  %v1048_v22 = vmul.f32 %v2048_v15, %v2032_v43  ;;  %v1609_v25 = vpop.permute.xlu1 %1608 }
 0x3ee   :  { %1989 = vmatprep.subr.mxu1 %v2169_v6  ;;  %v1051_v9 = vsel %vm2326_vm5, %v1043_v16, 0.0 }
 0x3ef   :  { %v2050_v17 = vpop.eup %2049  ;;  %1059 = vst.msk [vmem:[%s2585_s5] sm:$0xff] %vm182_vm2, %v1051_v9  ;;  %1957 = vmatmul.mubr.msk.f32.vlgmr.msra.gmra.mxu0 %vm182_vm2, %v1051_v9  ;;  %v1056_v18 = vsel %vm2400_vm12, %v1048_v22, 0.0 }
 0x3f0   :  { %v2052_v10 = vpop.eup %2051  ;;  %1965 = vmatpush3.msra.mxu0 %v1229_v54  ;;  %1064 = vst.msk [vmem:[%s2585_s5 + $0x28] sm:$0xff] %vm182_vm2, %v1056_v18  ;;  %1982 = vmatmul.mubr.msk.f32.vlgmr.msra.gmra.mxu1 %vm182_vm2, %v1056_v18  ;;  %v1049_v40 = vmul.f32 %v2050_v17, %v2469_v31 }
 0x3f1   :  { %1990 = vmatpush3.msra.mxu1 %v1609_v25  ;;  %1991 = vmatprep.mubr.msk.f32.mxu1 %vm2172_vm1, %v2169_v6  ;;  %v1050_v20 = vmul.f32 %v2052_v10, %v2472_v47 }
 0x3f2   :  { %1966 = vmatprep.mubr.msk.f32.mxu0 %vm2172_vm1, %v2169_v6  ;;  %1974 = vmatprep.subr.mxu0 %v2169_v6  ;;  %v1057_v34 = vsel %vm2404_vm13, %v1049_v40, 0.0 }
 0x3f3   :  { %v2054_v7 = vpop.eup %2053  ;;  %v1058_v21 = vsel %vm2427_vm6, %v1050_v20, 0.0  ;;  %1065 = vst.msk [vmem:[%s2585_s5 + $0x30] sm:$0xff] %vm182_vm2, %v1057_v34 }
 0x3f4   :  { %1066 = vst.msk [vmem:[%s2585_s5 + $0x38] sm:$0xff] %vm182_vm2, %v1058_v21  ;;  %1992 = vmatmul.mubr.msk.f32.vlgmr.msra.gmra.mxu1 %vm182_vm2, %v1058_v21  ;;  %v1045_v19 = vmul.f32 %v2054_v7, %v2478_v50 }
 0x3f6   :  { %v1053_v37 = vsel %vm2355_vm15, %v1045_v19, 0.0 }
 0x3f7   :  { %1061 = vst.msk [vmem:[%s2585_s5 + $0x10] sm:$0xff] %vm182_vm2, %v1053_v37  ;;  %1967 = vmatmul.mubr.msk.f32.vlgmr.msra.gmra.mxu0 %vm182_vm2, %v1053_v37  ;;  %s2178_s5 = smov 16  }
 0x3f8   :  { %1975 = vmatpush3.msra.mxu0 %v2488_v53  ;;  %1976 = vmatprep.mubr.msk.f32.mxu0 %vm2172_vm1, %v2169_v6 }
 0x3f9   :  { %1984 = vmatprep.subr.mxu0 %v2169_v6 }
 0x3fb   :  { %1977 = vmatmul.mubr.msk.f32.vlgmr.msra.gmra.mxu0 %vm182_vm2, %v1055_v8 }
 0x3fc   :  { %1985 = vmatpush3.msra.mxu0 %v1533_v51  ;;  %1986 = vmatprep.mubr.msk.f32.mxu0 %vm2172_vm1, %v2169_v6  ;;  %v81_v6 = vld [vmem:[#allocation8 + $0x8] sm:$0xff]  ;;  %vm1710_vm1 = vcmask 130048  }
 0x3fd   :  { %1994 = vmatprep.subr.mxu0 %v83_v27 }
 0x3ff   :  { %1987 = vmatmul.mubr.msk.f32.vlgmr.msra.gmra.mxu0 %vm182_vm2, %v1057_v34 }
 0x400   :  { %1995 = vmatpush3.msra.mxu0 %v83_v27 }
 0x401   :  { %1996 = vmatprep.subr.mxu0 %v82_v30 }
 0x402   :  { %1997 = vmatpush3.msra.mxu0 %v82_v30 }
 0x403   :  { %1998 = vmatprep.subr.mxu0 %v81_v6 }
 0x404   :  { %1999 = vmatpush3.msra.mxu0 %v81_v6 }
 0x405   :  { %2000 = vmatprep.subr.mxu0 %v80_v35 }
 0x406   :  { %2001 = vmatpush3.msra.mxu0 %v80_v35 }
 0x4a3   :  { %v1224_v5 = vpop.f32.mrf.mxu1 }
 0x4a4   :  { %1686 = vrot.lane.b32.xlu0 %v1224_v5, %s2166_s27 }
 0x4a5   :  { %v1963_v23 = vpop.f32.mrf.mxu1 }
 0x4ac   :  { %v1376_v24 = vpop.f32.mrf.mxu1 }
 0x4ae   :  { %v1973_v26 = vpop.f32.mrf.mxu1 }
 0x4af   :  { %v1148_v44 = vpop.f32.mrf.mxu0 }
 0x4b0   :  { %v1528_v28 = vpop.f32.mrf.mxu1 }
 0x4b1   :  { %1688 = vrot.lane.b32.xlu1 %v1528_v28, %s2166_s27  ;;  %v1958_v32 = vpop.f32.mrf.mxu0 }
 0x4b2   :  { %v1983_v33 = vpop.f32.mrf.mxu1 }
 0x4b4   :  { %v1680_v29 = vpop.f32.mrf.mxu1 }
 0x4b6   :  { %v1993_v36 = vpop.f32.mrf.mxu1 }
 0x4b7   :  { %v1300_v38 = vpop.f32.mrf.mxu0 }
 0x4b8   :  { %1694 = vrot.lane.b32.xlu0 %v1300_v38, %s2178_s5 }
 0x4b9   :  { %v1968_v41 = vpop.f32.mrf.mxu0 }
 0x4bb   :  { %v1452_v42 = vpop.f32.mrf.mxu0 }
 0x4bc   :  { %1702 = vrot.lane.b32.xlu0 %v1376_v24, %s2179_s21 }
 0x4bd   :  { %v1978_v43 = vpop.f32.mrf.mxu0 }
 0x4bf   :  { %v1604_v45 = vpop.f32.mrf.mxu0 }
 0x4c0   :  { %1696 = vrot.lane.b32.xlu1 %v1604_v45, %s2178_s5 }
 0x4c1   :  { %v1988_v31 = vpop.f32.mrf.mxu0 }
 0x4c4   :  { %1704 = vrot.lane.b32.xlu1 %v1680_v29, %s2179_s21 }
 0x516   :  { %v1687_v46 = vpop.permute.xlu0 %1686 }
 0x517   :  { %v1708_v48 = vsel %vm182_vm2, %v1148_v44, %v1687_v46 }
 0x523   :  { %v1689_v49 = vpop.permute.xlu1 %1688 }
 0x524   :  { %v1709_v55 = vsel %vm182_vm2, %v1452_v42, %v1689_v49 }
 0x52a   :  { %v1695_v47 = vpop.permute.xlu0 %1694 }
 0x52b   :  { %v1711_v50 = vsel %vm1710_vm1, %v1708_v48, %v1695_v47 }
 0x52e   :  { %v1703_v52 = vpop.permute.xlu0 %1702 }
 0x52f   :  { %v1714_v53 = vsel %vm1713_vm4, %v1711_v50, %v1703_v52 }
 0x530   :  { %2002 = vmatprep.mubr.msk.f32.mxu0 %vm84_vm0, %v1714_v53 }
 0x532   :  { %v1697_v54 = vpop.permute.xlu1 %1696 }
 0x533   :  { %v1712_v56 = vsel %vm1710_vm1, %v1709_v55, %v1697_v54 }
 0x536   :  { %v1705_v57 = vpop.permute.xlu1 %1704 }
 0x537   :  { %v1715_v58 = vsel %vm1713_vm4, %v1712_v56, %v1705_v57 }
 0x538   :  { %2003 = vmatmul.mubr.msk.f32.vlgmr.msra.gmra.mxu0 %vm84_vm0, %v1715_v58 }
 0x5f8   :  { %v2004_v59 = vpop.f32.mrf.mxu0 }
 0x5f9   :  { %1798 = vst.msk [vmem:[#allocation10 + $0x8] sm:$0xff] %vm84_vm0, %v2004_v59 }
 0x5fa   :  { %v1788_v60 = vpop.f32.mrf.mxu0 }
 0x5fb   :  { %1797 = vst.msk [vmem:[#allocation10] sm:$0xff] %vm84_vm0, %v1788_v60 }
 0x5fc   :  { %2146 = shalt.err (!%p2143_p10)
}
 0x5fd   :  { %1810 = dma.vmem_to_hbm [thread:$0]  %s1805_s23, 256, %s2584_s4, [#allocation4], %s2165_s26, %s2165_s26, %s2166_s27  }
 0x5fe   :  { %2161 = dma.done.wait [#allocation4], 256  }
 0x5ff   :  { %2162 = vsyncadd [#allocation4], 4294967040 }
 0x600   :  { %1818 = vsyncpa [#allocation3], 1 }
 0x601   :  { %1819 = vsyncpa [#allocation6], 1 }
 0x602   :  { %1820 = vsyncpa [#allocation9], 1 }
 0x603   :  { %1821 = vsyncpa [#allocation4], 1 }

</bundles_post_ra>
